<compile_context>
chip_gen: v7x
topology: tpu7x:2x2x1
jax: 0.10.0
libtpu: 0.0.40
codegen_flags: <defaults>
</compile_context>

<pallas_src>
import functools
import math

import jax
import jax.numpy as jnp
from jax.experimental import pallas as pl
from jax.experimental.pallas import tpu as pltpu

BN_EPS = 1e-5


# ---------------------------------------------------------------------------
# Small helpers
# ---------------------------------------------------------------------------
def _round_up(x, m):
    return (x + m - 1) // m * m


def _row_tile(m, target=512):
    """Largest multiple-of-8 divisor of m that is <= target (else full m)."""
    if m <= target:
        return m
    for t in range(target - target % 8, 7, -8):
        if m % t == 0:
            return t
    return m


def _k_tile(k, cap=1024):
    """Largest multiple-of-128 divisor of k that is <= cap (else full k)."""
    if k <= cap:
        return k
    for t in range(cap - cap % 128, 127, -128):
        if k % t == 0:
            return t
    return k


def _apply_act(x, act):
    if act == "relu":
        return jnp.maximum(x, 0.0)
    if act == "leaky_relu":
        return jnp.where(x > 0, x, 0.01 * x)  # PyTorch LeakyReLU default slope
    return x


# ---------------------------------------------------------------------------
# Pallas kernel 1: tiled matmul with BN-affine + activation epilogue
# ---------------------------------------------------------------------------
def _fused_matmul_kernel(x_ref, w_ref, s_ref, b_ref, o_ref, acc_ref, *, act):
    @pl.when(pl.program_id(2) == 0)
    def _init():
        acc_ref[...] = jnp.zeros_like(acc_ref)

    acc_ref[...] += jnp.dot(x_ref[...], w_ref[...],
                            preferred_element_type=jnp.float32)

    @pl.when(pl.program_id(2) == pl.num_programs(2) - 1)
    def _finalize():
        acc = acc_ref[...] * s_ref[...] + b_ref[...]
        o_ref[...] = _apply_act(acc, act).astype(o_ref.dtype)


def fused_matmul(x, w, scale=None, bias=None, act="none", out_dtype=jnp.bfloat16):
    """act((x @ w) * scale + bias); bf16 MXU operands, f32 accum + epilogue."""
    M, K = x.shape
    K2, N = w.shape
    assert K == K2
    x = x.astype(jnp.bfloat16)
    w = w.astype(jnp.bfloat16)
    if scale is None:
        scale = jnp.ones((N,), jnp.float32)
    if bias is None:
        bias = jnp.zeros((N,), jnp.float32)

    n_pad = _round_up(N, 128)
    if n_pad != N:
        w = jnp.pad(w, ((0, 0), (0, n_pad - N)))
        scale = jnp.pad(scale, (0, n_pad - N))
        bias = jnp.pad(bias, (0, n_pad - N))
    scale = scale.reshape(1, n_pad).astype(jnp.float32)
    bias = bias.reshape(1, n_pad).astype(jnp.float32)

    tm = _row_tile(M, 512)
    tn = 256 if n_pad % 256 == 0 else 128
    tk = _k_tile(K, 1024)

    out = pl.pallas_call(
        functools.partial(_fused_matmul_kernel, act=act),
        out_shape=jax.ShapeDtypeStruct((M, n_pad), out_dtype),
        grid=(M // tm, n_pad // tn, K // tk),
        in_specs=[
            pl.BlockSpec((tm, tk), lambda i, j, k: (i, k)),
            pl.BlockSpec((tk, tn), lambda i, j, k: (k, j)),
            pl.BlockSpec((1, tn), lambda i, j, k: (0, j)),
            pl.BlockSpec((1, tn), lambda i, j, k: (0, j)),
        ],
        out_specs=pl.BlockSpec((tm, tn), lambda i, j, k: (i, j)),
        scratch_shapes=[pltpu.VMEM((tm, tn), jnp.float32)],
        compiler_params=pltpu.CompilerParams(
            dimension_semantics=("parallel", "parallel", "arbitrary")),
    )(x, w, scale, bias)
    return out if n_pad == N else out[:, :N]


# ---------------------------------------------------------------------------
# Pallas kernel 2: stride-1 KxK conv + BN + act, im2col done *inside* VMEM.
#
# The (zero-padded) image is flattened to a (L, Cin) raster; on that raster
# every conv tap (i, j) is a constant shift i*Wp + j, so the kernel simply
# accumulates kh*kw shifted-window matmuls.  Garbage columns (ow >= Wo) are
# computed on the padded raster and stripped afterwards.
# ---------------------------------------------------------------------------
def _conv_s1_kernel(x_ref, w_ref, s_ref, b_ref, o_ref, *, kh, kw, wp, qp, act):
    acc = jnp.zeros((qp, o_ref.shape[-1]), jnp.float32)
    t = 0
    for i in range(kh):
        for j in range(kw):
            off = i * wp + j
            lhs = x_ref[0, off:off + qp, :]             # (qp, Cin) bf16
            acc = acc + jnp.dot(lhs, w_ref[t],
                                preferred_element_type=jnp.float32)
            t += 1
    acc = _apply_act(acc * s_ref[...] + b_ref[...], act)
    o_ref[...] = acc[None, :, :].astype(o_ref.dtype)


def conv_s1_spatial(x, w, scale, bias, padding, act):
    kh, kw, cin, cout = w.shape
    n, h, wdt, _ = x.shape
    hp, wp = h + 2 * padding, wdt + 2 * padding
    ho, wo = hp - kh + 1, wp - kw + 1
    qp = _round_up(ho * wp, 8)                          # raster positions computed
    max_off = (kh - 1) * wp + (kw - 1)
    extra_rows = max(0, -(-(qp + max_off - hp * wp) // wp))
    x_pad = jnp.pad(x, ((0, 0), (padding, padding + extra_rows),
                        (padding, padding), (0, 0)))
    l_tot = (hp + extra_rows) * wp
    x2 = x_pad.reshape(n, l_tot, cin)

    n_pad = _round_up(cout, 128)
    tco = 256 if n_pad % 256 == 0 else 128
    w3 = w.astype(jnp.bfloat16).reshape(kh * kw, cin, cout)
    if n_pad != cout:
        w3 = jnp.pad(w3, ((0, 0), (0, 0), (0, n_pad - cout)))
        scale = jnp.pad(scale, (0, n_pad - cout))
        bias = jnp.pad(bias, (0, n_pad - cout))
    scale = scale.reshape(1, n_pad).astype(jnp.float32)
    bias = bias.reshape(1, n_pad).astype(jnp.float32)

    out = pl.pallas_call(
        functools.partial(_conv_s1_kernel, kh=kh, kw=kw, wp=wp, qp=qp, act=act),
        out_shape=jax.ShapeDtypeStruct((n, qp, n_pad), jnp.bfloat16),
        grid=(n, n_pad // tco),
        in_specs=[
            pl.BlockSpec((1, l_tot, cin), lambda b, jc: (b, 0, 0)),
            pl.BlockSpec((kh * kw, cin, tco), lambda b, jc: (0, 0, jc)),
            pl.BlockSpec((1, tco), lambda b, jc: (0, jc)),
            pl.BlockSpec((1, tco), lambda b, jc: (0, jc)),
        ],
        out_specs=pl.BlockSpec((1, qp, tco), lambda b, jc: (b, 0, jc)),
        compiler_params=pltpu.CompilerParams(
            dimension_semantics=("parallel", "parallel")),
    )(x2, w3, scale, bias)
    out = out[:, : ho * wp, :cout].reshape(n, ho, wp, cout)[:, :, :wo, :]
    return out


# ---------------------------------------------------------------------------
# Pallas kernel 3: residual add + ReLU (row-tiled, bf16 in/out, f32 math)
# ---------------------------------------------------------------------------
def _add_relu_kernel(a_ref, b_ref, o_ref):
    s = a_ref[...].astype(jnp.float32) + b_ref[...].astype(jnp.float32)
    o_ref[...] = jnp.maximum(s, 0.0).astype(o_ref.dtype)


def add_relu(a, b):
    shape = a.shape
    c = shape[-1]
    m = a.size // c
    a2, b2 = a.reshape(m, c), b.reshape(m, c)
    tm = _row_tile(m, 512)
    out = pl.pallas_call(
        _add_relu_kernel,
        out_shape=jax.ShapeDtypeStruct((m, c), a.dtype),
        grid=(m // tm,),
        in_specs=[pl.BlockSpec((tm, c), lambda i: (i, 0)),
                  pl.BlockSpec((tm, c), lambda i: (i, 0))],
        out_specs=pl.BlockSpec((tm, c), lambda i: (i, 0)),
        compiler_params=pltpu.CompilerParams(dimension_semantics=("parallel",)),
    )(a2, b2)
    return out.reshape(shape)


# ---------------------------------------------------------------------------
# Conv / pooling glue
# ---------------------------------------------------------------------------
def im2col(x, kh, kw, stride, padding):
    n, h, w, c = x.shape
    ho = (h + 2 * padding - kh) // stride + 1
    wo = (w + 2 * padding - kw) // stride + 1
    xp = jnp.pad(x, ((0, 0), (padding, padding), (padding, padding), (0, 0)))
    cols = []
    for i in range(kh):
        for j in range(kw):
            cols.append(
                xp[:, i: i + (ho - 1) * stride + 1: stride,
                      j: j + (wo - 1) * stride + 1: stride, :]
            )
    cols = jnp.concatenate(cols, axis=-1)          # (N, Ho, Wo, kh*kw*C) bf16
    return cols.reshape(n * ho * wo, kh * kw * c), ho, wo


def conv_bn(x, p, act="none"):
    """Conv2d(bias=False) + BatchNorm2d(eval) + optional activation, fused."""
    w = p["w"]                                     # (kh, kw, Cin, Cout) bf16
    kh, kw, cin, cout = w.shape
    stride, padding = p["stride"], p["padding"]
    scale = p["gamma"] / jnp.sqrt(p["var"] + BN_EPS)
    bias = p["beta"] - p["mean"] * scale
    n = x.shape[0]

    if kh == 1 and kw == 1:
        # 1x1 conv: plain matmul on the (optionally subsampled) activations.
        xs = x if stride == 1 else x[:, ::stride, ::stride, :]
        _, h2, w2, _ = xs.shape
        out = fused_matmul(xs.reshape(n * h2 * w2, cin), w.reshape(cin, cout),
                           scale, bias, act=act)
        return out.reshape(n, h2, w2, cout)

    if stride == 1:
        # In-VMEM tap accumulation, no HBM im2col.
        return conv_s1_spatial(x, w, scale, bias, padding, act)

    # TODO(synk): the few strided spatial convs (7x7 conv1 + per-stage first
    # 3x3) still use a materialized (bf16) im2col; the stride-1 path avoids it.
    cols, ho, wo = im2col(x, kh, kw, stride, padding)
    out = fused_matmul(cols, w.reshape(kh * kw * cin, cout), scale, bias, act=act)
    return out.reshape(n, ho, wo, cout)


def maxpool_3x3_s2_p1(x):
    n, h, w, c = x.shape
    ho = (h + 2 - 3) // 2 + 1
    wo = (w + 2 - 3) // 2 + 1
    xp = jnp.pad(x, ((0, 0), (1, 1), (1, 1), (0, 0)), constant_values=-jnp.inf)
    out = None
    for i in range(3):
        for j in range(3):
            v = xp[:, i: i + (ho - 1) * 2 + 1: 2, j: j + (wo - 1) * 2 + 1: 2, :]
            out = v if out is None else jnp.maximum(out, v)
    return out


# ---------------------------------------------------------------------------
# Parameter construction (deterministic, in-script)
# ---------------------------------------------------------------------------
class KeyGen:
    def __init__(self, seed):
        self.key = jax.random.PRNGKey(seed)

    def __call__(self):
        self.key, sub = jax.random.split(self.key)
        return sub


def make_conv_bn(kg, cin, cout, k, stride, padding):
    fan_in = cin * k * k
    w = jax.random.normal(kg(), (k, k, cin, cout), jnp.float32) / math.sqrt(fan_in)
    return dict(
        w=w.astype(jnp.bfloat16),                  # MXU operands kept in bf16
        gamma=jnp.ones((cout,), jnp.float32),
        beta=jnp.zeros((cout,), jnp.float32),
        mean=jnp.zeros((cout,), jnp.float32),
        var=jnp.ones((cout,), jnp.float32),
        stride=stride,
        padding=padding,
    )


def make_linear(kg, fin, fout):
    # xavier-normal-style init (matches init_weights(..., 'xavier normal'))
    w = jax.random.normal(kg(), (fin, fout), jnp.float32) * math.sqrt(2.0 / (fin + fout))
    return dict(w=w.astype(jnp.bfloat16), b=jnp.zeros((fout,), jnp.float32))


def make_resnet50(kg, input_channels):
    params = {"conv1": make_conv_bn(kg, input_channels, 64, 7, 2, 3)}
    # (in_channels of first block, bottleneck width, num blocks, stride)
    cfg = [(64, 64, 3, 1), (256, 128, 4, 2), (512, 256, 6, 2), (1024, 512, 3, 2)]
    layers = []
    for cin0, mid, nblocks, stride0 in cfg:
        blocks = []
        for b in range(nblocks):
            s = stride0 if b == 0 else 1
            cin = cin0 if b == 0 else mid * 4
            need_down = (s != 1) or (cin != mid * 4)
            blocks.append(
                dict(
                    conv1=make_conv_bn(kg, cin, mid, 1, 1, 0),
                    conv2=make_conv_bn(kg, mid, mid, 3, s, 1),
                    conv3=make_conv_bn(kg, mid, mid * 4, 1, 1, 0),
                    down=make_conv_bn(kg, cin, mid * 4, 1, s, 0) if need_down else None,
                )
            )
        layers.append(blocks)
    params["layers"] = layers
    return params


def make_eo2resnet_osm(kg, input_channels, num_classes, osm_dim, scale_factor=1):
    assert scale_factor == 1, "lin_scale branch only triggers for scale_factor != 1"
    p = {"cnn": make_resnet50(kg, input_channels)}
    # TODO(synk): `linear_resnet50` is not defined in the provided source; using a
    # single Linear(osm_dim -> 2048 * scale_factor) stand-in with the same width.
    p["osm_linear"] = make_linear(kg, osm_dim, 2048 * scale_factor)
    p["final1"] = make_linear(kg, 4096, 2048)
    p["final2"] = make_linear(kg, 2048, 1024)
    p["clf"] = make_linear(kg, 1024, num_classes)
    return p


# ---------------------------------------------------------------------------
# Forward pass
# ---------------------------------------------------------------------------
def bottleneck_forward(x, p):
    out = conv_bn(x, p["conv1"], act="relu")
    out = conv_bn(out, p["conv2"], act="relu")
    out = conv_bn(out, p["conv3"], act="none")
    identity = conv_bn(x, p["down"], act="none") if p["down"] is not None else x
    return add_relu(out, identity)


def resnet50_forward(x, params):
    x = conv_bn(x, params["conv1"], act="relu")
    x = maxpool_3x3_s2_p1(x)
    for blocks in params["layers"]:
        for block in blocks:
            x = bottleneck_forward(x, block)
    # adaptive avg pool (1,1) + flatten -> (B, 2048)
    return jnp.mean(x.astype(jnp.float32), axis=(1, 2)).astype(jnp.bfloat16)


def eo2resnet_osm_forward(params, inputs_nchw, osm_in):
    x = jnp.transpose(inputs_nchw, (0, 2, 3, 1)).astype(jnp.bfloat16)  # NCHW->NHWC bf16
    feat = resnet50_forward(x, params["cnn"])                          # (B, 2048)
    osm = osm_in.reshape(osm_in.shape[0], -1).astype(jnp.bfloat16)
    osm_out = fused_matmul(osm, params["osm_linear"]["w"],
                           bias=params["osm_linear"]["b"], act="none")  # (B, 2048)
    h = jnp.concatenate([feat, osm_out], axis=1)                       # (B, 4096)
    # TODO(synk): the three tiny FC-tail matmuls (M = batch) could be fused into a
    # single pallas_call to shave launch overhead; kept separate for clarity.
    h = fused_matmul(h, params["final1"]["w"], bias=params["final1"]["b"],
                     act="leaky_relu")
    h = fused_matmul(h, params["final2"]["w"], bias=params["final2"]["b"],
                     act="leaky_relu")
    out = fused_matmul(h, params["clf"]["w"], bias=params["clf"]["b"],
                       act="none", out_dtype=jnp.float32)
    return out                                                          # (B, num_classes)


# ---------------------------------------------------------------------------
# Main
# ---------------------------------------------------------------------------
if __name__ == "__main__":
    batch, input_channels, spatial = 2, 4, 16
    osm_dim, num_classes = 64, 10

    key = jax.random.PRNGKey(0)
    k_img, k_osm = jax.random.split(key)
    inputs = jax.random.normal(k_img, (batch, input_channels, spatial, spatial),
                               jnp.float32)
    osm_in = jax.random.normal(k_osm, (batch, osm_dim), jnp.float32)

    params = make_eo2resnet_osm(KeyGen(42), input_channels, num_classes, osm_dim,
                                scale_factor=1)

    out = eo2resnet_osm_forward(params, inputs, osm_in)
    out = jax.block_until_ready(out)
    assert out.shape == (batch, num_classes)
    assert bool(jnp.all(jnp.isfinite(out)))
    print("KERNEL_OK")
</pallas_src>

<mosaic_0001>
module attributes {stable_mosaic.version = 11 : i64} {
  func.func @_fused_matmul_kernel(%arg0: i32, %arg1: i32, %arg2: i32, %arg3: memref<128x196xbf16, #tpu.memory_space<vmem>>, %arg4: memref<196x128xbf16, #tpu.memory_space<vmem>>, %arg5: memref<1x128xf32, #tpu.memory_space<vmem>>, %arg6: memref<1x128xf32, #tpu.memory_space<vmem>>, %arg7: memref<128x128xbf16, #tpu.memory_space<vmem>>, %arg8: memref<128x128xf32, #tpu.memory_space<vmem>>) attributes {dimension_semantics = [#tpu.dimension_semantics<parallel>, #tpu.dimension_semantics<parallel>, #tpu.dimension_semantics<arbitrary>], iteration_bounds = array<i64: 1, 1, 1>, scalar_prefetch = 0 : i64, scratch_operands = 1 : i64, tpu.core_type = #tpu.core_type<tc>, window_params = [{transform_indices = @transform_0, window_bounds = array<i64: 128, 196>}, {transform_indices = @transform_1, window_bounds = array<i64: 196, 128>}, {transform_indices = @transform_2, window_bounds = array<i64: 1, 128>}, {transform_indices = @transform_3, window_bounds = array<i64: 1, 128>}, {transform_indices = @transform_4, window_bounds = array<i64: 128, 128>}]} {
    %c0_i32 = arith.constant 0 : i32
    %0 = arith.cmpi eq, %arg2, %c0_i32 : i32
    %1 = arith.extui %0 : i1 to i32
    %c0_i32_0 = arith.constant 0 : i32
    %2 = arith.cmpi ne, %1, %c0_i32_0 : i32
    scf.if %2 {
      %cst_10 = arith.constant 0.000000e+00 : f32
      %12 = vector.broadcast %cst_10 : f32 to vector<128x128xf32>
      %c0_11 = arith.constant 0 : index
      %c0_12 = arith.constant 0 : index
      %13 = vector.load %arg8[%c0_11, %c0_12] : memref<128x128xf32, #tpu.memory_space<vmem>>, vector<128x128xf32>
      tpu.vector_store %arg8[%c0_11, %c0_12], %12 {strides = array<i32>} : memref<128x128xf32, #tpu.memory_space<vmem>>, vector<128x128xf32>,
    } else {
    }
    %c0 = arith.constant 0 : index
    %c0_1 = arith.constant 0 : index
    %3 = vector.load %arg8[%c0, %c0_1] : memref<128x128xf32, #tpu.memory_space<vmem>>, vector<128x128xf32>
    %c0_2 = arith.constant 0 : index
    %c0_3 = arith.constant 0 : index
    %4 = vector.load %arg3[%c0_2, %c0_3] : memref<128x196xbf16, #tpu.memory_space<vmem>>, vector<128x196xbf16>
    %c0_4 = arith.constant 0 : index
    %c0_5 = arith.constant 0 : index
    %5 = vector.load %arg4[%c0_4, %c0_5] : memref<196x128xbf16, #tpu.memory_space<vmem>>, vector<196x128xbf16>
    %cst = arith.constant dense<0.000000e+00> : vector<128x128xf32>
    %6 = tpu.matmul %4, %5, %cst {dimension_numbers = #tpu.dot_dimension_numbers<[1], [0], [0], [1], [0, 0, 1, 1], [], []>} : vector<128x196xbf16>, vector<196x128xbf16>, vector<128x128xf32> -> vector<128x128xf32>
    %7 = arith.addf %3, %6 : vector<128x128xf32>
    %c0_6 = arith.constant 0 : index
    %c0_7 = arith.constant 0 : index
    %8 = vector.load %arg8[%c0_6, %c0_7] : memref<128x128xf32, #tpu.memory_space<vmem>>, vector<128x128xf32>
    tpu.vector_store %arg8[%c0_6, %c0_7], %7 {strides = array<i32>} : memref<128x128xf32, #tpu.memory_space<vmem>>, vector<128x128xf32>,
    %c0_i32_8 = arith.constant 0 : i32
    %9 = arith.cmpi eq, %arg2, %c0_i32_8 : i32
    %10 = arith.extui %9 : i1 to i32
    %c0_i32_9 = arith.constant 0 : i32
    %11 = arith.cmpi ne, %10, %c0_i32_9 : i32
    scf.if %11 {
      %c0_10 = arith.constant 0 : index
      %c0_11 = arith.constant 0 : index
      %12 = vector.load %arg8[%c0_10, %c0_11] : memref<128x128xf32, #tpu.memory_space<vmem>>, vector<128x128xf32>
      %c0_12 = arith.constant 0 : index
      %c0_13 = arith.constant 0 : index
      %13 = vector.load %arg5[%c0_12, %c0_13] : memref<1x128xf32, #tpu.memory_space<vmem>>, vector<1x128xf32>
      %14 = vector.broadcast %13 : vector<1x128xf32> to vector<128x128xf32>
      %15 = arith.mulf %12, %14 : vector<128x128xf32>
      %c0_14 = arith.constant 0 : index
      %c0_15 = arith.constant 0 : index
      %16 = vector.load %arg6[%c0_14, %c0_15] : memref<1x128xf32, #tpu.memory_space<vmem>>, vector<1x128xf32>
      %17 = vector.broadcast %16 : vector<1x128xf32> to vector<128x128xf32>
      %18 = arith.addf %15, %17 : vector<128x128xf32>
      %cst_16 = arith.constant 0.000000e+00 : f32
      %19 = vector.broadcast %cst_16 : f32 to vector<128x128xf32>
      %20 = arith.maximumf %18, %19 : vector<128x128xf32>
      %21 = arith.truncf %20 : vector<128x128xf32> to vector<128x128xbf16>
      %c0_17 = arith.constant 0 : index
      %c0_18 = arith.constant 0 : index
      %22 = vector.load %arg7[%c0_17, %c0_18] : memref<128x128xbf16, #tpu.memory_space<vmem>>, vector<128x128xbf16>
      tpu.vector_store %arg7[%c0_17, %c0_18], %21 {strides = array<i32>} : memref<128x128xbf16, #tpu.memory_space<vmem>>, vector<128x128xbf16>,
    } else {
    }
    return
  }
  func.func @transform_0(%arg0: i32, %arg1: i32, %arg2: i32) -> (i32, i32) {
    %c0_i32 = arith.constant 0 : i32
    return %arg0, %arg2 : i32, i32
  }
  func.func @transform_1(%arg0: i32, %arg1: i32, %arg2: i32) -> (i32, i32) {
    %c0_i32 = arith.constant 0 : i32
    return %arg2, %arg1 : i32, i32
  }
  func.func @transform_2(%arg0: i32, %arg1: i32, %arg2: i32) -> (i32, i32) {
    %c0_i32 = arith.constant 0 : i32
    %c0_i32_0 = arith.constant 0 : i32
    return %c0_i32, %arg1 : i32, i32
  }
  func.func @transform_3(%arg0: i32, %arg1: i32, %arg2: i32) -> (i32, i32) {
    %c0_i32 = arith.constant 0 : i32
    %c0_i32_0 = arith.constant 0 : i32
    return %c0_i32, %arg1 : i32, i32
  }
  func.func @transform_4(%arg0: i32, %arg1: i32, %arg2: i32) -> (i32, i32) {
    %c0_i32 = arith.constant 0 : i32
    return %arg0, %arg1 : i32, i32
  }
}

</mosaic_0001>

<bundles_post_ra>
// kernel: tpu_custom_call.1
= control target key start
LH: loop header
LB: loop body
LE: loop exit
PB: predicated region body
PF: predicated region fallthrough
CT: control target
= control target key end

     0   :  { %v787_v1 = vmov 0   ;;  %vm243_vm0 = vcmask 556032   ;;  %s991_s0 = inlined_call_operand.vmem [shape: bf16[128,196], index: 0, kind: input, shape index: {}]   ;;  %s992_s1 = inlined_call_operand.vmem [shape: bf16[196,128], index: 1, kind: input, shape index: {}]   ;;  %s993_s2 = inlined_call_operand.vmem [shape: f32[1,128], index: 2, kind: input, shape index: {}]   ;;  %s994_s3 = inlined_call_operand.vmem [shape: f32[1,128], index: 3, kind: input, shape index: {}]   ;;  %s995_s4 = inlined_call_operand.hbm [shape: bf16[128,128], index: 4, kind: output, shape index: {}]  }
   0x1   :  { %v726_v0 = vld [vmem:[%s992_s1] sm:$0xff]   ;;  %272 = vmatprep.subr.bf16.mxu0 %v787_v1  ;;  %696 = vmatprep.subr.bf16.mxu1 %v787_v1  ;;  %v727_v2 = vld [vmem:[%s992_s1 + $0x8] sm:$0xff]   ;;  %v728_v3 = vld [vmem:[%s992_s1 + $0x10] sm:$0xff]  }
   0x2   :  { %273 = vmatpush1.bf16.msra.mxu0 %v726_v0  ;;  %709 = vmatpush1.bf16.msra.mxu1 %v726_v0  ;;  %v729_v4 = vld [vmem:[%s992_s1 + $0x18] sm:$0xff]   ;;  %v741_v5 = vld [vmem:[%s991_s0 + $0x4] ss:$8 sps:$4 sm:$0xff]   ;;  %v732_v9 = vld [vmem:[%s992_s1 + $0x30] sm:$0xff]  }
   0x3   :  { %274 = vmatprep.subr.bf16.mxu0 %v787_v1  ;;  %697 = vmatprep.subr.bf16.mxu1 %v787_v1  ;;  %v730_v6 = vld [vmem:[%s992_s1 + $0x20] sm:$0xff]   ;;  %v731_v8 = vld [vmem:[%s992_s1 + $0x28] sm:$0xff]  }
   0x4   :  { %v744_v7 = vld [vmem:[%s991_s0 + $0x44] ss:$8 sps:$4 sm:$0xff]   ;;  %607 = vmatprep.mubr.msk.bf16.mxu0 %vm243_vm0, %v741_v5 }
   0x5   :  { %611 = vmatprep.mubr.msk.bf16.mxu1 %vm243_vm0, %v744_v7 }
   0x6   :  { %275 = vmatpush1.bf16.msra.mxu0 %v727_v2  ;;  %710 = vmatpush1.bf16.msra.mxu1 %v727_v2 }
   0x7   :  { %276 = vmatprep.subr.bf16.mxu0 %v787_v1  ;;  %698 = vmatprep.subr.bf16.mxu1 %v787_v1 }
   0xa   :  { %277 = vmatpush1.bf16.msra.mxu0 %v728_v3  ;;  %711 = vmatpush1.bf16.msra.mxu1 %v728_v3 }
   0xb   :  { %278 = vmatprep.subr.bf16.mxu0 %v787_v1  ;;  %699 = vmatprep.subr.bf16.mxu1 %v787_v1 }
   0xe   :  { %279 = vmatpush1.bf16.msra.mxu0 %v729_v4  ;;  %712 = vmatpush1.bf16.msra.mxu1 %v729_v4 }
   0xf   :  { %280 = vmatprep.subr.bf16.mxu0 %v787_v1  ;;  %700 = vmatprep.subr.bf16.mxu1 %v787_v1 }
  0x12   :  { %281 = vmatpush1.bf16.msra.mxu0 %v730_v6  ;;  %713 = vmatpush1.bf16.msra.mxu1 %v730_v6 }
  0x13   :  { %282 = vmatprep.subr.bf16.mxu0 %v787_v1  ;;  %701 = vmatprep.subr.bf16.mxu1 %v787_v1 }
  0x16   :  { %283 = vmatpush1.bf16.msra.mxu0 %v731_v8  ;;  %714 = vmatpush1.bf16.msra.mxu1 %v731_v8 }
  0x17   :  { %284 = vmatprep.subr.bf16.mxu0 %v787_v1  ;;  %702 = vmatprep.subr.bf16.mxu1 %v787_v1 }
  0x18   :  { %9 = vsyncpa [#allocation4], 0  ;;  %v733_v10 = vld [vmem:[%s992_s1 + $0x38] sm:$0xff]   ;;  %v734_v11 = vld [vmem:[%s992_s1 + $0x40] sm:$0xff]   ;;  %vm268_vm1 = vcmask 1041408  }
  0x19   :  { %v735_v12 = vld [vmem:[%s992_s1 + $0x48] sm:$0xff]   ;;  %v736_v13 = vld [vmem:[%s992_s1 + $0x50] sm:$0xff]   ;;  %v737_v14 = vld [vmem:[%s992_s1 + $0x58] sm:$0xff]  }
  0x1a   :  { %285 = vmatpush1.bf16.msra.mxu0 %v732_v9  ;;  %715 = vmatpush1.bf16.msra.mxu1 %v732_v9  ;;  %v738_v15 = vld [vmem:[%s992_s1 + $0x60] ss:$0 sps:$4 sm:$0x33]   ;;  %v745_v19 = vld [vmem:[%s991_s0 + $0x14] ss:$8 sps:$4 sm:$0xff]  }
  0x1b   :  { %286 = vmatprep.subr.bf16.mxu0 %v787_v1  ;;  %703 = vmatprep.subr.bf16.mxu1 %v787_v1  ;;  %v270_v16 = vsel %vm268_vm1, %v738_v15, 0  ;;  %v739_v17 = vld [vmem:[%s991_s0] ss:$8 sps:$4 sm:$0xff]   ;;  %v747_v20 = vld [vmem:[%s991_s0 + $0x54] ss:$8 sps:$4 sm:$0xff]  }
  0x1c   :  { %v742_v18 = vld [vmem:[%s991_s0 + $0x40] ss:$8 sps:$4 sm:$0xff]   ;;  %v749_v21 = vld [vmem:[%s991_s0 + $0x10] ss:$8 sps:$4 sm:$0xff]   ;;  %v751_v23 = vld [vmem:[%s991_s0 + $0x24] ss:$8 sps:$4 sm:$0xff]  }
  0x1d   :  { %v750_v22 = vld [vmem:[%s991_s0 + $0x50] ss:$8 sps:$4 sm:$0xff]   ;;  %v753_v24 = vld [vmem:[%s991_s0 + $0x64] ss:$8 sps:$4 sm:$0xff]   ;;  %v755_v25 = vld [vmem:[%s991_s0 + $0x20] ss:$8 sps:$4 sm:$0xff]  }
  0x1e   :  { %287 = vmatpush1.bf16.msra.mxu0 %v733_v10  ;;  %716 = vmatpush1.bf16.msra.mxu1 %v733_v10  ;;  %v756_v26 = vld [vmem:[%s991_s0 + $0x60] ss:$8 sps:$4 sm:$0xff]   ;;  %v757_v27 = vld [vmem:[%s991_s0 + $0x34] ss:$8 sps:$4 sm:$0xff]   ;;  %v761_v29 = vld [vmem:[%s991_s0 + $0x30] ss:$8 sps:$4 sm:$0xff]  }
  0x1f   :  { %288 = vmatprep.subr.bf16.mxu0 %v787_v1  ;;  %704 = vmatprep.subr.bf16.mxu1 %v787_v1  ;;  %v759_v28 = vld [vmem:[%s991_s0 + $0x74] ss:$8 sps:$4 sm:$0xff]   ;;  %v762_v30 = vld [vmem:[%s991_s0 + $0x70] ss:$8 sps:$4 sm:$0xff]   ;;  %v940_v31 = vld [vmem:[%s993_s2] ss:$0 sm:$0xff] }
  0x20   :  { %v945_v33 = vld [vmem:[%s994_s3] ss:$0 sm:$0xff]  ;;  %s788_s0 = smov [#allocation3]  }
  0x21   :  { %s567_s2 = sshll.u32 %s788_s0, 4  ;;  %s568_s2 = int_to_ptr.vmem [resolvable:$true] %s567_s2 }
  0x22   :  { %289 = vmatpush1.bf16.msra.mxu0 %v734_v11  ;;  %717 = vmatpush1.bf16.msra.mxu1 %v734_v11  ;;  %s763_s3 = scalar_lea.vmem %s568_s2, 1024  ;;  %p768_p1 = scmp.lt.s32.totalorder %s568_s2, %s568_s2 }
  0x23   :  { %290 = vmatprep.subr.bf16.mxu0 %v787_v1  ;;  %705 = vmatprep.subr.bf16.mxu1 %v787_v1  ;;  %p764_p0 = scmp.ne.s32.totalorder %s568_s2, %s763_s3  ;;  %p769_p2 = scmp.lt.s32.totalorder %s763_s3, %s763_s3 }
  0x25   :  { %p770_p3 = por %p769_p2, %p768_p1 }
  0x26   :  { %291 = vmatpush1.bf16.msra.mxu0 %v735_v12  ;;  %718 = vmatpush1.bf16.msra.mxu1 %v735_v12 }
  0x27   :  { %292 = vmatprep.subr.bf16.mxu0 %v787_v1  ;;  %706 = vmatprep.subr.bf16.mxu1 %v787_v1  ;;  %p771_p4 = pnand %p770_p3, %p764_p0 }
  0x2a   :  { %293 = vmatpush1.bf16.msra.mxu0 %v736_v13  ;;  %719 = vmatpush1.bf16.msra.mxu1 %v736_v13 }
  0x2b   :  { %294 = vmatprep.subr.bf16.mxu0 %v787_v1  ;;  %707 = vmatprep.subr.bf16.mxu1 %v787_v1 }
  0x2e   :  { %295 = vmatpush1.bf16.msra.mxu0 %v737_v14  ;;  %720 = vmatpush1.bf16.msra.mxu1 %v737_v14 }
  0x2f   :  { %296 = vmatprep.subr.bf16.mxu0 %v787_v1  ;;  %708 = vmatprep.subr.bf16.mxu1 %v787_v1 }
  0x32   :  { %297 = vmatpush1.bf16.msra.mxu0 %v270_v16  ;;  %721 = vmatpush1.bf16.msra.mxu1 %v270_v16 }
  0x35   :  { %305 = vmatmul.mubr.bf16.vlgmr.msra.gmra.mrb[0].mxu0 %v739_v17  ;;  %337 = vmatmul.mubr.bf16.vlgmr.msra.gmra.mrb[0].mxu1 %v742_v18 }
  0x36   :  { %608 = vmatprep.mubr.msk.bf16.mxu0 %vm243_vm0, %v745_v19  ;;  %612 = vmatprep.mubr.msk.bf16.mxu1 %vm243_vm0, %v747_v20 }
  0x3d   :  { %313 = vmatmul.mubr.bf16.gmra.mrb[4].mxu0 %v749_v21  ;;  %345 = vmatmul.mubr.bf16.gmra.mrb[4].mxu1 %v750_v22 }
  0x3e   :  { %609 = vmatprep.mubr.msk.bf16.mxu0 %vm243_vm0, %v751_v23  ;;  %613 = vmatprep.mubr.msk.bf16.mxu1 %vm243_vm0, %v753_v24 }
  0x45   :  { %321 = vmatmul.mubr.bf16.gmra.mrb[8].mxu0 %v755_v25  ;;  %353 = vmatmul.mubr.bf16.gmra.mrb[8].mxu1 %v756_v26 }
  0x46   :  { %610 = vmatprep.mubr.msk.bf16.mxu0 %vm243_vm0, %v757_v27  ;;  %614 = vmatprep.mubr.msk.bf16.mxu1 %vm243_vm0, %v759_v28 }
  0x4d   :  { %329 = vmatmul.mubr.bf16.gmra.mrb[12].mxu0 %v761_v29  ;;  %361 = vmatmul.mubr.bf16.gmra.mrb[12].mxu1 %v762_v30 }
 0x108   :  { %v306_v32 = vpop.f32.mrb[0].mxu0  ;;  %v338_v34 = vpop.f32.mrb[0].mxu1 }
 0x109   :  { %v427_v35 = vmul.f32 %v940_v31, %v306_v32  ;;  %v435_v36 = vmul.f32 %v940_v31, %v338_v34  ;;  %v308_v37 = vpop.f32.mrb[1].mxu0  ;;  %v340_v38 = vpop.f32.mrb[1].mxu1 }
 0x10a   :  { %v309_v39 = vpop.f32.mrb[2].mxu0  ;;  %v341_v40 = vpop.f32.mrb[2].mxu1 }
 0x10b   :  { %v450_v41 = vadd.f32 %v945_v33, %v427_v35  ;;  %v458_v42 = vadd.f32 %v945_v33, %v435_v36  ;;  %v428_v43 = vmul.f32 %v940_v31, %v309_v39  ;;  %v436_v44 = vmul.f32 %v940_v31, %v341_v40  ;;  %v311_v45 = vpop.f32.mrb[3].mxu0  ;;  %v343_v46 = vpop.f32.mrb[3].mxu1 }
 0x10d   :  { %v451_v47 = vadd.f32 %v945_v33, %v428_v43  ;;  %v459_v48 = vadd.f32 %v945_v33, %v436_v44  ;;  %v466_v49 = vmax.f32 %v450_v41, 0.0  ;;  %v474_v50 = vmax.f32 %v458_v42, 0.0 }
 0x10f   :  { %v467_v51 = vmax.f32 %v451_v47, 0.0  ;;  %v475_v52 = vmax.f32 %v459_v48, 0.0 }
 0x110   :  { %v314_v53 = vpop.f32.mrb[4].mxu0  ;;  %v346_v54 = vpop.f32.mrb[4].mxu1 }
 0x111   :  { %v652_v55 = vpack.c.bf16 %v467_v51, %v466_v49  ;;  %v672_v56 = vpack.c.bf16 %v475_v52, %v474_v50  ;;  %v429_v57 = vmul.f32 %v940_v31, %v314_v53  ;;  %v437_v58 = vmul.f32 %v940_v31, %v346_v54  ;;  %v316_v59 = vpop.f32.mrb[5].mxu0  ;;  %v348_v60 = vpop.f32.mrb[5].mxu1 }
 0x112   :  { %v317_v61 = vpop.f32.mrb[6].mxu0  ;;  %v349_v62 = vpop.f32.mrb[6].mxu1 }
 0x113   :  { %653 = vst [vmem:[#allocation3] sm:$0xff] %v652_v55   ;;  %692 = vst [vmem:[#allocation3 + $0x20] sm:$0xff] %v672_v56   ;;  %v452_v63 = vadd.f32 %v945_v33, %v429_v57  ;;  %v460_v0 = vadd.f32 %v945_v33, %v437_v58  ;;  %v430_v1 = vmul.f32 %v940_v31, %v317_v61  ;;  %v319_v3 = vpop.f32.mrb[7].mxu0  ;;  %v351_v4 = vpop.f32.mrb[7].mxu1 }
 0x114   :  { %v438_v2 = vmul.f32 %v940_v31, %v349_v62 }
 0x115   :  { %v453_v5 = vadd.f32 %v945_v33, %v430_v1  ;;  %v468_v7 = vmax.f32 %v452_v63, 0.0  ;;  %v476_v8 = vmax.f32 %v460_v0, 0.0 }
 0x116   :  { %v461_v6 = vadd.f32 %v945_v33, %v438_v2 }
 0x117   :  { %v469_v9 = vmax.f32 %v453_v5, 0.0 }
 0x118   :  { %v477_v10 = vmax.f32 %v461_v6, 0.0  ;;  %v322_v11 = vpop.f32.mrb[8].mxu0  ;;  %v354_v12 = vpop.f32.mrb[8].mxu1 }
 0x119   :  { %v657_v13 = vpack.c.bf16 %v469_v9, %v468_v7  ;;  %v431_v15 = vmul.f32 %v940_v31, %v322_v11  ;;  %v439_v16 = vmul.f32 %v940_v31, %v354_v12  ;;  %v324_v17 = vpop.f32.mrb[9].mxu0  ;;  %v356_v18 = vpop.f32.mrb[9].mxu1 }
 0x11a   :  { %v677_v14 = vpack.c.bf16 %v477_v10, %v476_v8  ;;  %v325_v19 = vpop.f32.mrb[10].mxu0  ;;  %v357_v20 = vpop.f32.mrb[10].mxu1 }
 0x11b   :  { %689 = vst [vmem:[#allocation3 + $0x8] sm:$0xff] %v657_v13   ;;  %v454_v21 = vadd.f32 %v945_v33, %v431_v15  ;;  %v462_v22 = vadd.f32 %v945_v33, %v439_v16  ;;  %v432_v23 = vmul.f32 %v940_v31, %v325_v19  ;;  %v440_v24 = vmul.f32 %v940_v31, %v357_v20  ;;  %v327_v25 = vpop.f32.mrb[11].mxu0  ;;  %v359_v26 = vpop.f32.mrb[11].mxu1 }
 0x11c   :  { %693 = vst [vmem:[#allocation3 + $0x28] sm:$0xff] %v677_v14  }
 0x11d   :  { %v455_v27 = vadd.f32 %v945_v33, %v432_v23  ;;  %v463_v28 = vadd.f32 %v945_v33, %v440_v24  ;;  %v470_v29 = vmax.f32 %v454_v21, 0.0  ;;  %v478_v30 = vmax.f32 %v462_v22, 0.0 }
 0x11f   :  { %v471_v32 = vmax.f32 %v455_v27, 0.0  ;;  %v479_v34 = vmax.f32 %v463_v28, 0.0 }
 0x120   :  { %v330_v35 = vpop.f32.mrb[12].mxu0  ;;  %v362_v36 = vpop.f32.mrb[12].mxu1 }
 0x121   :  { %v662_v37 = vpack.c.bf16 %v471_v32, %v470_v29  ;;  %v682_v38 = vpack.c.bf16 %v479_v34, %v478_v30  ;;  %v433_v39 = vmul.f32 %v940_v31, %v330_v35  ;;  %v441_v40 = vmul.f32 %v940_v31, %v362_v36  ;;  %v332_v41 = vpop.f32.mrb[13].mxu0  ;;  %v364_v42 = vpop.f32.mrb[13].mxu1 }
 0x122   :  { %v333_v43 = vpop.f32.mrb[14].mxu0  ;;  %v365_v44 = vpop.f32.mrb[14].mxu1 }
 0x123   :  { %690 = vst [vmem:[#allocation3 + $0x10] sm:$0xff] %v662_v37   ;;  %694 = vst [vmem:[#allocation3 + $0x30] sm:$0xff] %v682_v38   ;;  %v456_v45 = vadd.f32 %v945_v33, %v433_v39  ;;  %v464_v46 = vadd.f32 %v945_v33, %v441_v40  ;;  %v434_v47 = vmul.f32 %v940_v31, %v333_v43  ;;  %v335_v49 = vpop.f32.mrb[15].mxu0  ;;  %v367_v50 = vpop.f32.mrb[15].mxu1 }
 0x124   :  { %v442_v48 = vmul.f32 %v940_v31, %v365_v44 }
 0x125   :  { %v457_v51 = vadd.f32 %v945_v33, %v434_v47  ;;  %v472_v53 = vmax.f32 %v456_v45, 0.0  ;;  %v480_v54 = vmax.f32 %v464_v46, 0.0 }
 0x126   :  { %v465_v52 = vadd.f32 %v945_v33, %v442_v48 }
 0x127   :  { %v473_v55 = vmax.f32 %v457_v51, 0.0 }
 0x128   :  { %v481_v56 = vmax.f32 %v465_v52, 0.0 }
 0x129   :  { %v667_v57 = vpack.c.bf16 %v473_v55, %v472_v53 }
 0x12a   :  { %v687_v58 = vpack.c.bf16 %v481_v56, %v480_v54 }
 0x12b   :  { %691 = vst [vmem:[#allocation3 + $0x18] sm:$0xff] %v667_v57  }
 0x12c   :  { %695 = vst [vmem:[#allocation3 + $0x38] sm:$0xff] %v687_v58  }
 0x12d   :  { %774 = shalt.err (!%p771_p4)
}
 0x12e   :  { %s775_s25 = scalar_lea.hbm %s995_s4, 1024 }
 0x12f   :  { %p776_p5 = scmp.ne.s32.totalorder %s995_s4, %s775_s25  ;;  %p779_p6 = scmp.lt.u32.totalorder %s775_s25, %s995_s4 }
 0x131   :  { %p781_p7 = pnand %p779_p6, %p776_p5 }
 0x133   :  { %784 = shalt.err (!%p781_p7)
}
 0x134   :  { %s789_s30 = smov 64   ;;  %s790_s5 = smov 4  }
 0x135   :  { %573 = dma.vmem_to_hbm [thread:$0]  %s568_s2, 1024, %s995_s4, [#allocation4], %s789_s30, %s789_s30, %s790_s5  }
 0x136   :  { %785 = dma.done.wait [#allocation4], 1024  }
 0x137   :  { %786 = vsyncadd [#allocation4], 4294966272 }
 0x138   :  { %577 = vsyncpa [#allocation4], 1 }

</bundles_post_ra>
